<compile_context>
chip_gen: v5e
topology: v5e:2x2
jax: 0.10.0
libtpu: 0.0.40
codegen_flags: <defaults>
</compile_context>

<pallas_src>
import jax
import jax.numpy as jnp
from jax import lax
from jax.experimental import pallas as pl
from jax.experimental.pallas import tpu as pltpu


# ----------------------------------------------------------------------------- kernel


def _make_unpool_kernel(g, s, W, out_dtype, compute_dtype, precision):
    D = s * W                 # per-group data-stripe width (nonzero columns)
    Cg = s * s * W            # per-group output chunk width
    aligned = (D % 128 == 0)  # chunk boundaries lane-aligned -> fully dense stores
    out_dtype = jnp.dtype(out_dtype)
    compute_dtype = jnp.dtype(compute_dtype)

    def kernel(x_ref, scat_ref, o_ref):
        rb = o_ref.shape[0]
        xv = x_ref[...]
        if xv.dtype != compute_dtype:
            xv = xv.astype(compute_dtype)
        # Small one-hot matmul produces ONLY the data stripes (1/s of the output block).
        stripes = jnp.dot(
            xv, scat_ref[...],
            precision=precision,
            preferred_element_type=jnp.float32,
        ).astype(out_dtype)                                   # (rb, g*D)

        if aligned:
            # Dense, lane-aligned stores: per group the data stripe then its zero tail.
            zpad = jnp.zeros((rb, Cg - D), out_dtype)
            for v in range(g):
                o_ref[:, v * Cg: v * Cg + D] = stripes[:, v * D:(v + 1) * D]
                o_ref[:, v * Cg + D:(v + 1) * Cg] = zpad
        else:
            # Small-width case: one dense zero pass over the block, then narrow masked
            # stripe stores (only 1/s of the block is rewritten).
            o_ref[...] = jnp.zeros(o_ref.shape, out_dtype)
            for v in range(g):
                o_ref[:, v * Cg: v * Cg + D] = stripes[:, v * D:(v + 1) * D]

    return kernel


# ----------------------------------------------------------------------------- helpers


def _choose_row_group(R, W, lane=128):
    """Group `g` consecutive input rows so the INPUT block last dim (g*W) is lane-dense
    (>= 128).  Requires g | R; falls back to 1."""
    if W >= lane or R <= 1:
        return 1
    want = -(-lane // W)                     # ceil(128 / W)
    for cand in range(want, min(R, 8 * want) + 1):
        if R % cand == 0:
            return cand
    return 1


def _choose_block_rows(Rg, row_bytes, budget, sub):
    """Row-block size from a VMEM budget.  Keeps >= 2 grid steps when possible (v7x
    megacore / pipelining), rounds to the dtype sublane multiple, prefers a divisor of Rg
    so the last block isn't a masked partial block."""
    rb = max(sub, int(budget // max(row_bytes, 1)))
    if Rg > sub:
        half = -(-Rg // 2)
        half = -(-half // sub) * sub         # at least 2 grid steps
        rb = min(rb, half)
    rb = min(rb, Rg)
    if rb < Rg:
        rb = max(sub, (rb // sub) * sub)     # sublane multiple (8 f32 / 16 bf16 / 32 int8)
        for cand in range(rb, max(sub, rb // 2) - 1, -sub):
            if Rg % cand == 0:               # divisor of Rg -> no masked tail
                return int(cand)
    return int(rb)


def _scatter_matrix(W, s, g, dtype):
    """(g*W, g*s*W) block-diagonal one-hot: grouped input element p = v*W + j goes to
    data-stripe column v*(s*W) + j*s; all other columns 0."""
    p = jnp.arange(g * W, dtype=jnp.int32)
    target = (p // W) * (s * W) + (p % W) * s
    cols = jnp.arange(g * s * W, dtype=jnp.int32)
    return (cols[None, :] == target[:, None]).astype(dtype)


# ----------------------------------------------------------------------------- wrapper


def unpool(x, stride):
    """Zero-insertion unpool, equivalent to the module's forward pass.

    x: (N, C, H, W) -> (N, C, H*s, W*s) with x at the top-left of every s x s cell.
    The module's grouped conv_transpose2d weights are the fixed one-hot pattern set in
    __init__, so they are specialized away here.
    """
    N, C, H, W = x.shape
    s = int(stride)
    if s == 1:
        return x                              # 1x1 one-hot transposed conv is identity

    R = N * C * H
    g = _choose_row_group(R, W)               # lane-density grouping on the INPUT width
    Rg = R // g
    Wg = g * W                                # input block last dim
    Dg = g * s * W                            # data-stripe width produced by the matmul
    Og = g * s * s * W                        # output block last dim

    out_dtype = jnp.dtype(x.dtype)
    if jnp.issubdtype(out_dtype, jnp.floating):
        compute_dtype = out_dtype
    else:
        # TODO(synk): integer inputs take the f32 matmul path (exact only up to 2^24);
        # the reference conv_transpose2d is float-only anyway.
        compute_dtype = jnp.dtype(jnp.float32)
    low_prec = compute_dtype in (jnp.dtype(jnp.bfloat16), jnp.dtype(jnp.float16))
    precision = lax.Precision.DEFAULT if low_prec else lax.Precision.HIGHEST

    # Metadata-only reshape: memory layout of x / out is unchanged.
    x2 = x.reshape(Rg, Wg)
    scat = _scatter_matrix(W, s, g, compute_dtype)

    itemsize = out_dtype.itemsize
    sub = max(8, 32 // itemsize)              # sublane multiple per dtype

    # Chip-aware VMEM budgets (v5e/v6e: 128 MiB physical, v7x: 64 MiB).
    try:
        vmem_cap = int(pltpu.get_tpu_info().vmem_capacity_bytes)
    except Exception:
        vmem_cap = 64 * 1024 * 1024           # conservative fallback works on all parts
    vmem_limit = max(32 * 1024 * 1024, min(96 * 1024 * 1024, (vmem_cap * 5) // 8))
    block_budget = (vmem_limit * 3) // 5
    scat_bytes = Wg * Dg * compute_dtype.itemsize
    row_budget = max(1 << 20, block_budget - 2 * scat_bytes)
    row_bytes = 2 * (Wg + Og) * itemsize      # double-buffered input + output per row

    rb = _choose_block_rows(Rg, row_bytes, row_budget, sub)
    grid = (pl.cdiv(Rg, rb),)

    kernel = _make_unpool_kernel(g, s, W, out_dtype, compute_dtype, precision)

    out2 = pl.pallas_call(
        kernel,
        out_shape=jax.ShapeDtypeStruct((Rg, Og), out_dtype),
        grid_spec=pltpu.PrefetchScalarGridSpec(
            num_scalar_prefetch=0,
            grid=grid,
            in_specs=[
                pl.BlockSpec((rb, Wg), lambda i: (i, 0)),
                # constant block index -> DMA'd once, stays resident in VMEM
                pl.BlockSpec((Wg, Dg), lambda i: (0, 0)),
            ],
            out_specs=pl.BlockSpec((rb, Og), lambda i: (i, 0)),
        ),
        compiler_params=pltpu.CompilerParams(
            dimension_semantics=("parallel",),
            vmem_limit_bytes=int(vmem_limit),
        ),
        cost_estimate=pl.CostEstimate(
            flops=int(2 * Rg * Wg * Dg),      # stripe matmul only (true work)
            transcendentals=0,
            bytes_accessed=int((Rg * Wg + Rg * Og) * itemsize + scat_bytes),
        ),
    )(x2, scat)

    return out2.reshape(N, C, H * s, W * s)


# ----------------------------------------------------------------------------- reference


def unpool_reference(x, stride):
    # Pure-JAX reference for conv_transpose2d with the module's fixed one-hot weights.
    N, C, H, W = x.shape
    s = stride
    out = jnp.zeros((N, C, H, s, W, s), dtype=x.dtype)
    out = out.at[:, :, :, 0, :, 0].set(x)
    return out.reshape(N, C, H * s, W * s)


if __name__ == "__main__":
    key = jax.random.PRNGKey(0)
    N, C, H, W = 2, 4, 16, 16
    stride = 2

    x = jax.random.normal(key, (N, C, H, W), dtype=jnp.float32)

    out = unpool(x, stride)
    out = jax.block_until_ready(out)

    ref = unpool_reference(x, stride)
    assert out.shape == (N, C, H * stride, W * stride)
    assert jnp.allclose(out, ref, atol=1e-6), "mismatch vs reference"

    print("KERNEL_OK")
</pallas_src>

<mosaic_0001>
module attributes {stable_mosaic.version = 11 : i64} {
  func.func @kernel(%arg0: i32, %arg1: memref<8x128xf32, #tpu.memory_space<vmem>>, %arg2: memref<128x256xf32, #tpu.memory_space<vmem>>, %arg3: memref<8x512xf32, #tpu.memory_space<vmem>>) attributes {dimension_semantics = [#tpu.dimension_semantics<parallel>], iteration_bounds = array<i64: 2>, scalar_prefetch = 0 : i64, scratch_operands = 0 : i64, tpu.core_type = #tpu.core_type<tc>, window_params = [{transform_indices = @transform_0, window_bounds = array<i64: 8, 128>}, {pipeline_mode = #tpu.pipeline_mode<synchronous>, transform_indices = @transform_1, window_bounds = array<i64: 128, 256>}, {transform_indices = @transform_2, window_bounds = array<i64: 8, 512>}]} {
    %c0 = arith.constant 0 : index
    %c0_0 = arith.constant 0 : index
    %0 = vector.load %arg1[%c0, %c0_0] : memref<8x128xf32, #tpu.memory_space<vmem>>, vector<8x128xf32>
    %c0_1 = arith.constant 0 : index
    %c0_2 = arith.constant 0 : index
    %1 = vector.load %arg2[%c0_1, %c0_2] : memref<128x256xf32, #tpu.memory_space<vmem>>, vector<128x256xf32>
    %cst = arith.constant dense<0.000000e+00> : vector<8x256xf32>
    %2 = tpu.matmul %0, %1, %cst {dimension_numbers = #tpu.dot_dimension_numbers<[1], [0], [0], [1], [0, 0, 1, 1], [], []>, precision = #tpu.contract_precision<fp32>} : vector<8x128xf32>, vector<128x256xf32>, vector<8x256xf32> -> vector<8x256xf32>
    %cst_3 = arith.constant 0.000000e+00 : f32
    %3 = vector.broadcast %cst_3 : f32 to vector<8x512xf32>
    %c0_4 = arith.constant 0 : index
    %c0_5 = arith.constant 0 : index
    %4 = vector.load %arg3[%c0_4, %c0_5] : memref<8x512xf32, #tpu.memory_space<vmem>>, vector<8x512xf32>
    tpu.vector_store %arg3[%c0_4, %c0_5], %3 {strides = array<i32>} : memref<8x512xf32, #tpu.memory_space<vmem>>, vector<8x512xf32>,
    %5 = vector.extract_strided_slice %2 {offsets = [0, 0], sizes = [8, 32], strides = [1, 1]} : vector<8x256xf32> to vector<8x32xf32>
    %c0_6 = arith.constant 0 : index
    %c0_7 = arith.constant 0 : index
    %6 = vector.load %arg3[%c0_6, %c0_7] : memref<8x512xf32, #tpu.memory_space<vmem>>, vector<8x32xf32>
    tpu.vector_store %arg3[%c0_6, %c0_7], %5 {strides = array<i32>} : memref<8x512xf32, #tpu.memory_space<vmem>>, vector<8x32xf32>,
    %7 = vector.extract_strided_slice %2 {offsets = [0, 32], sizes = [8, 32], strides = [1, 1]} : vector<8x256xf32> to vector<8x32xf32>
    %c0_8 = arith.constant 0 : index
    %c64 = arith.constant 64 : index
    %8 = vector.load %arg3[%c0_8, %c64] : memref<8x512xf32, #tpu.memory_space<vmem>>, vector<8x32xf32>
    tpu.vector_store %arg3[%c0_8, %c64], %7 {strides = array<i32>} : memref<8x512xf32, #tpu.memory_space<vmem>>, vector<8x32xf32>,
    %9 = vector.extract_strided_slice %2 {offsets = [0, 64], sizes = [8, 32], strides = [1, 1]} : vector<8x256xf32> to vector<8x32xf32>
    %c0_9 = arith.constant 0 : index
    %c128 = arith.constant 128 : index
    %10 = vector.load %arg3[%c0_9, %c128] : memref<8x512xf32, #tpu.memory_space<vmem>>, vector<8x32xf32>
    tpu.vector_store %arg3[%c0_9, %c128], %9 {strides = array<i32>} : memref<8x512xf32, #tpu.memory_space<vmem>>, vector<8x32xf32>,
    %11 = vector.extract_strided_slice %2 {offsets = [0, 96], sizes = [8, 32], strides = [1, 1]} : vector<8x256xf32> to vector<8x32xf32>
    %c0_10 = arith.constant 0 : index
    %c192 = arith.constant 192 : index
    %12 = vector.load %arg3[%c0_10, %c192] : memref<8x512xf32, #tpu.memory_space<vmem>>, vector<8x32xf32>
    tpu.vector_store %arg3[%c0_10, %c192], %11 {strides = array<i32>} : memref<8x512xf32, #tpu.memory_space<vmem>>, vector<8x32xf32>,
    %13 = vector.extract_strided_slice %2 {offsets = [0, 128], sizes = [8, 32], strides = [1, 1]} : vector<8x256xf32> to vector<8x32xf32>
    %c0_11 = arith.constant 0 : index
    %c256 = arith.constant 256 : index
    %14 = vector.load %arg3[%c0_11, %c256] : memref<8x512xf32, #tpu.memory_space<vmem>>, vector<8x32xf32>
    tpu.vector_store %arg3[%c0_11, %c256], %13 {strides = array<i32>} : memref<8x512xf32, #tpu.memory_space<vmem>>, vector<8x32xf32>,
    %15 = vector.extract_strided_slice %2 {offsets = [0, 160], sizes = [8, 32], strides = [1, 1]} : vector<8x256xf32> to vector<8x32xf32>
    %c0_12 = arith.constant 0 : index
    %c320 = arith.constant 320 : index
    %16 = vector.load %arg3[%c0_12, %c320] : memref<8x512xf32, #tpu.memory_space<vmem>>, vector<8x32xf32>
    tpu.vector_store %arg3[%c0_12, %c320], %15 {strides = array<i32>} : memref<8x512xf32, #tpu.memory_space<vmem>>, vector<8x32xf32>,
    %17 = vector.extract_strided_slice %2 {offsets = [0, 192], sizes = [8, 32], strides = [1, 1]} : vector<8x256xf32> to vector<8x32xf32>
    %c0_13 = arith.constant 0 : index
    %c384 = arith.constant 384 : index
    %18 = vector.load %arg3[%c0_13, %c384] : memref<8x512xf32, #tpu.memory_space<vmem>>, vector<8x32xf32>
    tpu.vector_store %arg3[%c0_13, %c384], %17 {strides = array<i32>} : memref<8x512xf32, #tpu.memory_space<vmem>>, vector<8x32xf32>,
    %19 = vector.extract_strided_slice %2 {offsets = [0, 224], sizes = [8, 32], strides = [1, 1]} : vector<8x256xf32> to vector<8x32xf32>
    %c0_14 = arith.constant 0 : index
    %c448 = arith.constant 448 : index
    %20 = vector.load %arg3[%c0_14, %c448] : memref<8x512xf32, #tpu.memory_space<vmem>>, vector<8x32xf32>
    tpu.vector_store %arg3[%c0_14, %c448], %19 {strides = array<i32>} : memref<8x512xf32, #tpu.memory_space<vmem>>, vector<8x32xf32>,
    return
  }
  func.func @transform_0(%arg0: i32) -> (i32, i32) {
    %c0_i32 = arith.constant 0 : i32
    %c0_i32_0 = arith.constant 0 : i32
    return %arg0, %c0_i32 : i32, i32
  }
  func.func @transform_1(%arg0: i32) -> (i32, i32) {
    %c0_i32 = arith.constant 0 : i32
    %c0_i32_0 = arith.constant 0 : i32
    %c0_i32_1 = arith.constant 0 : i32
    return %c0_i32, %c0_i32_0 : i32, i32
  }
  func.func @transform_2(%arg0: i32) -> (i32, i32) {
    %c0_i32 = arith.constant 0 : i32
    %c0_i32_0 = arith.constant 0 : i32
    return %arg0, %c0_i32 : i32, i32
  }
}

</mosaic_0001>

<bundles_post_ra>
// kernel: tpu_custom_call.1
= control target key start
LH: loop header
LB: loop body
LE: loop exit
PB: predicated region body
PF: predicated region fallthrough
CT: control target
= control target key end

     0   :  { %7 = vsyncpa [#allocation3], 0  ;;  %s1924_s0 = inlined_call_operand.hbm [shape: f32[16,128], index: 0, kind: input, shape index: {}]   ;;  %s1925_s1 = inlined_call_operand.hbm [shape: f32[128,256], index: 1, kind: input, shape index: {}]   ;;  %s1926_s2 = inlined_call_operand.hbm [shape: f32[16,512], index: 2, kind: output, shape index: {}]  }
   0x1   :  { %9 = vsyncpa [#allocation3 + $0x1], 0 }
   0x2   :  { %10 = vsyncpa [#allocation6], 0 }
   0x3   :  { %11 = vsyncpa [#allocation4], 0 }
   0x4   :  { %13 = vsyncpa [#allocation4 + $0x1], 0  ;;  %s1257_s9 = smov 0   ;;  %s1259_s10 = smov 0  }
   0x5   :  { %s1261_s11 = smov 0   ;;  %s1263_s12 = smov 0  }
   0x6 LB: > { %s108_s15 = sshll.u32 %s1925_s1, 4  ;;  %s1281_s16 = sadd.s32 4294967295, %s1233_s12   ;;  %s1233_s12 = sphi %s1263_s12, %s2000_s12   ;;  %s1229_s11 = sphi %s1261_s11, %s1999_s11   ;;  %s1225_s10 = sphi %s1259_s10, %s1998_s10   ;;  %s1221_s9 = sphi %s1257_s9, %s1997_s9   ;;  %s109_s15 = int_to_ptr.hbm [resolvable:$true] %s108_s15 }
   0x7   : > { %p1025_p0 = scmp.ge.s32.totalorder %s1233_s12, 1  ;;  %p40_p1 = scmp.eq.s32.totalorder %s1281_s16, 0 }
   0x8   : > { %p97_p2 = scmp.lt.s32.totalorder %s1233_s12, 3  ;;  %s1235_s18 = smov [#allocation5]  }
   0x9   : > { %s110_s19 = sshll.u32 %s1235_s18, 4  ;;  %s1236_s20 = smov 256   ;;  %s111_s19 = int_to_ptr.vmem [resolvable:$true] %s110_s19 }
   0xa   : > { %p1286_p3 = pnand %p1025_p0, %p97_p2  ;;  %s1237_s21 = smov 16  }
   0xb   : > { %s1024_s22 = sadd.s32 4294967294, %s1233_s12   ;;  %s1297_s23 = sadd.s32 1, %s1233_s12  }
   0xc   : > { %p1048_p4 = pneg %p1286_p3  ;;  %s26_s24 = sadd.s32 1, %s1229_s11 }
   0xd   : > { %s23_s25 = ssub.s32 %s1233_s12, %s1297_s23  ;;  %p33_p7 = scmp.ne.s32.totalorder %s1229_s11, %s1225_s10 }
   0xe   : > { %p1049_p6 = pnand %p1048_p4, %p40_p1  ;;  %p24_p8 = scmp.eq.s32.totalorder %s23_s25, 0 }
   0xf   : > { %p34_p9 = scmp.eq.s32.totalorder %s1233_s12, 0  ;;  %p39_p10 = scmp.ne.s32.totalorder %s1225_s10, %s1221_s9 }
  0x10   : > { %1051 = dma.hbm_to_vmem [thread:$0]  (!%p1049_p6), %s109_s15, 4096, %s111_s19, [#allocation6], %s1236_s20, %s1236_s20, %s1237_s21  }
  0x11   : > { %p84_p11 = scmp.eq.s32.totalorder %s1281_s16, 1  ;;  %p1313_p12 = por %p40_p1, %p39_p10 }
  0x12   : > { %s1309_s26 = scalar_select %p24_p8, %s1229_s11, %s26_s24  }
  0x13   : > { %p1317_p13 = por %p84_p11, %p33_p7  ;;  %p90_p0 = scmp.eq.s32.totalorder %s1024_s22, 1 }
  0x14   : > { %p35_p2 = por %p34_p9, %p33_p7  ;;  %s124_s29 = sand.u32 1, %s1229_s11  }
  0x15   : > { %p1322_p4 = por %p90_p0, %p39_p10  ;;  %p1061_p6 = scmp.lt.s32.totalorder %s1233_s12, 2 }
  0x16   : > { %s1028_s3 = sshll.u32 %s124_s29, 3  ;;  %s1029_s4 = sshll.u32 %s1233_s12, 3 }
  0x17   : > { %s132_s7 = scalar_lea.hbm %s1924_s0, %s1029_s4  ;;  %s128_s13 = scalar_lea.vmem [#allocation2], %s1028_s3 }
  0x18   : > { %s134_s8 = sshll.u32 %s132_s7, 4  ;;  %s136_s14 = sshll.u32 %s128_s13, 4  ;;  %s135_s8 = int_to_ptr.hbm [resolvable:$true] %s134_s8  ;;  %s137_s14 = int_to_ptr.vmem [resolvable:$true] %s136_s14 }
  0x19   : > { %p1331_p8 = pnand %p1061_p6, %p35_p2  ;;  %s125_s18 = scalar_lea.sflag [#allocation3], %s124_s29 }
  0x1a   : > { %s1133_s19 = sshra.s32 %s135_s8, 4  ;;  %s1140_s24 = scalar_lea.hbm %s1924_s0, 16  ;;  %s1134_s19 = int_to_ptr.hbm [resolvable:$true] %s1133_s19 }
  0x1b   : > { %s1135_s20 = scalar_lea.hbm %s1134_s19, 8  ;;  %p1137_p9 = pneg %p1331_p8 }
  0x1c   : > { %p1136_p7 = scmp.ne.s32.totalorder %s1134_s19, %s1135_s20  ;;  %p1141_p0 = scmp.lt.s32.totalorder %s1134_s19, %s1924_s0 }
  0x1d   : > { %p1142_p2 = scmp.lt.s32.totalorder %s1140_s24, %s1135_s20 }
  0x1e   : > { %p1138_p10 = pnand %p1137_p9, %p1136_p7 }
  0x1f   : > { %p1143_p6 = por %p1142_p2, %p1141_p0 }
  0x20   : > { %p1139_p11 = pneg %p1138_p10 }
  0x22   : > { %p1144_p5 = pnand %p1143_p6, %p1139_p11 }
  0x24   : > { %1147 = shalt.err (!%p1144_p5)
}
  0x25   : > { %1055 = dma.hbm_to_vmem [thread:$0]  (!%p1331_p8), %s135_s8, 128, %s137_s14, %s125_s18  }
  0x26   : > { %145 = sbr.rel (%p1286_p3) target bundleno = 408 (0x198), region = 28 }
  0x2b   : > { %s1348_s29 = sand.u32 1, %s1225_s10  }
  0x2c   : > { %s1031_s4 = sshll.u32 %s1348_s29, 3  ;;  %s148_s5 = scalar_lea.sflag [#allocation3], %s1348_s29 }
  0x2d   : > { %s1352_s6 = scalar_lea.vmem [#allocation2], %s1031_s4 }
  0x2e   : > { %1208 = dma.done.wait (%p1313_p12), %s148_s5, 128  }
  0x2f   : > { %1210 = vsyncadd (%p1313_p12), %s148_s5, 4294967168 }
  0x30   : > { %1212 = dma.done.wait (%p40_p1), [#allocation6], 4096  }
  0x31   : > { %1214 = vsyncadd (%p40_p1), [#allocation6], 4294963200  ;;  %v209_v0 = vld [vmem:[#allocation5 + $0xf0] sm:$0xff]  ;;  %v207_v1 = vld [vmem:[#allocation5 + $0xe0] sm:$0xff]  ;;  %s1033_s17 = sshll.u32 %s1348_s29, 5  ;;  %vm897_vm0 = vcmask 261120  }
  0x32   : > { %v205_v2 = vld [vmem:[#allocation5 + $0xd0] sm:$0xff]  ;;  %v1362_v3 = vand.u32 4294901760, %v209_v0  ;;  %v1364_v4 = vand.u32 4294901760, %v207_v1  ;;  %v203_v6 = vld [vmem:[#allocation5 + $0xc0] sm:$0xff]  ;;  %v210_v55 = vld [vmem:[#allocation5 + $0xf8] sm:$0xff]  ;;  %s1868_s27 = scalar_lea.vmem [#allocation7], %s1033_s17 }
  0x33   : > { %v1366_v5 = vand.u32 4294901760, %v205_v2  ;;  %v201_v7 = vld [vmem:[#allocation5 + $0xb0] sm:$0xff]  ;;  %v199_v8 = vld [vmem:[#allocation5 + $0xa0] sm:$0xff]  ;;  %v1368_v9 = vand.u32 4294901760, %v203_v6  ;;  %v208_v63 = vld [vmem:[#allocation5 + $0xe8] sm:$0xff]  ;;  %s1239_s7 = smov 32  }
  0x34   : > { %v1370_v10 = vand.u32 4294901760, %v201_v7  ;;  %v1372_v11 = vand.u32 4294901760, %v199_v8  ;;  %v197_v12 = vld [vmem:[#allocation5 + $0x90] sm:$0xff]  ;;  %v195_v13 = vld [vmem:[#allocation5 + $0x80] sm:$0xff]  ;;  %212 = vmatpush.msra.mxu0 %v1362_v3  ;;  %v1376_v14 = vsub.f32 %v209_v0, %v1362_v3  ;;  %v1379_v15 = vsub.f32 %v207_v1, %v1364_v4  ;;  %408 = vmatpush.msra.mxu3 %v1362_v3  ;;  %s1240_s8 = smov 64   ;;  %s1241_s13 = smov 96  }
  0x35   : > { %v1383_v16 = vsub.f32 %v205_v2, %v1366_v5  ;;  %v1385_v17 = vand.u32 4294901760, %v197_v12  ;;  %v1388_v18 = vsub.f32 %v203_v6, %v1368_v9  ;;  %v1393_v20 = vand.u32 4294901760, %v195_v13  ;;  %v193_v21 = vld [vmem:[#allocation5 + $0x70] sm:$0xff]  ;;  %v191_v34 = vld [vmem:[#allocation5 + $0x60] sm:$0xff]  ;;  %s1039_s14 = sshll.u32 %s1281_s16, 5  ;;  %s941_s20 = sshll.u32 %s1868_s27, 4  ;;  %s942_s20 = int_to_ptr.vmem [resolvable:$true] %s941_s20 }
  0x36   : > { %v1391_v19 = vsub.f32 %v201_v7, %v1370_v10  ;;  %355 = vmatpush.msra.mxu2 %v1376_v14  ;;  %214 = vmatpush.msra.mxu0 %v1364_v4  ;;  %v1941_v22 = vand.u32 4294901760, %v1376_v14  ;;  %v1940_v23 = vand.u32 4294901760, %v1379_v15  ;;  %v1401_v25 = vsub.f32 %v199_v8, %v1372_v11  ;;  %v189_v35 = vld [vmem:[#allocation5 + $0x50] sm:$0xff]  ;;  %v187_v42 = vld [vmem:[#allocation5 + $0x40] sm:$0xff]  ;;  %s939_s19 = scalar_lea.hbm %s1926_s2, %s1039_s14  ;;  %s928_s22 = scalar_lea.sflag [#allocation4], %s1348_s29 }
  0x37   : > { %v1939_v24 = vand.u32 4294901760, %v1383_v16  ;;  %410 = vmatpush.msra.mxu3 %v1364_v4  ;;  %v1936_v26 = vand.u32 4294901760, %v1388_v18  ;;  %v1407_v28 = vsub.f32 %v197_v12, %v1385_v17  ;;  %v1420_v32 = vand.u32 4294901760, %v193_v21  ;;  %v185_v48 = vld [vmem:[#allocation5 + $0x30] sm:$0xff]  ;;  %v183_v53 = vld [vmem:[#allocation5 + $0x20] sm:$0xff]  ;;  %s943_s21 = sshll.u32 %s939_s19, 4  ;;  %s944_s21 = int_to_ptr.hbm [resolvable:$true] %s943_s21 }
  0x38   : > { %v1935_v27 = vand.u32 4294901760, %v1391_v19  ;;  %358 = vmatpush.msra.mxu2 %v1379_v15  ;;  %216 = vmatpush.msra.mxu0 %v1366_v5  ;;  %v255_v29 = vsub.f32 %v1376_v14, %v1941_v22  ;;  %v261_v30 = vsub.f32 %v1379_v15, %v1940_v23  ;;  %v1424_v33 = vsub.f32 %v195_v13, %v1393_v20  ;;  %v181_v60 = vld [vmem:[#allocation5 + $0x10] sm:$0xff]  ;;  %v179_v6 = vld [vmem:[#allocation5] sm:$0xff]  ;;  %v206_v13 = vld [vmem:[#allocation5 + $0xd8] sm:$0xff]  ;;  %s1177_s24 = sshra.s32 %s944_s21, 4  ;;  %s1183_s4 = scalar_lea.hbm %s1926_s2, 64  ;;  %s1178_s24 = int_to_ptr.hbm [resolvable:$true] %s1177_s24 }
  0x39   : > { %v267_v31 = vsub.f32 %v1383_v16, %v1939_v24  ;;  %412 = vmatpush.msra.mxu3 %v1366_v5  ;;  %v273_v38 = vsub.f32 %v1388_v18, %v1936_v26  ;;  %v1933_v39 = vand.u32 4294901760, %v1401_v25  ;;  %v1437_v41 = vsub.f32 %v193_v21, %v1420_v32  ;;  %s1179_s25 = scalar_lea.hbm %s1178_s24, 32  ;;  %p1184_p12 = scmp.lt.s32.totalorder %s1178_s24, %s1926_s2 }
  0x3a   : > { %v256_v36 = vand.u32 4294901760, %v255_v29  ;;  %361 = vmatpush.msra.mxu2 %v1383_v16  ;;  %218 = vmatpush.msra.mxu0 %v1368_v9  ;;  %v262_v37 = vand.u32 4294901760, %v261_v30  ;;  %v279_v40 = vsub.f32 %v1391_v19, %v1935_v27  ;;  %v1932_v44 = vand.u32 4294901760, %v1407_v28  ;;  %p1180_p1 = scmp.ne.s32.totalorder %s1178_s24, %s1179_s25  ;;  %p1185_p8 = scmp.lt.s32.totalorder %s1183_s4, %s1179_s25 }
  0x3b   : > { %414 = vmatpush.msra.mxu3 %v1368_v9  ;;  %v268_v43 = vand.u32 4294901760, %v267_v31  ;;  %v1441_v45 = vand.u32 4294901760, %v191_v34  ;;  %v1443_v46 = vand.u32 4294901760, %v189_v35  ;;  %v1931_v47 = vand.u32 4294901760, %v1424_v33 }
  0x3c   : > { %257 = vmatpush.msra.mxu1 %v256_v36  ;;  %364 = vmatpush.msra.mxu2 %v1388_v18  ;;  %v274_v49 = vand.u32 4294901760, %v273_v38  ;;  %v285_v50 = vsub.f32 %v1401_v25, %v1933_v39  ;;  %v1455_v52 = vand.u32 4294901760, %v187_v42  ;;  %v1929_v54 = vand.u32 4294901760, %v1437_v41  ;;  %v196_v39 = vld [vmem:[#allocation5 + $0x88] sm:$0xff]  ;;  %p1181_p3 = pnand %p1180_p1, %p1317_p13  ;;  %p1186_p7 = por %p1185_p8, %p1184_p12 }
  0x3d   : > { %220 = vmatpush.msra.mxu0 %v1370_v10  ;;  %416 = vmatpush.msra.mxu3 %v1370_v10  ;;  %v1453_v51 = vsub.f32 %v191_v34, %v1441_v45  ;;  %v280_v56 = vand.u32 4294901760, %v279_v40  ;;  %v291_v57 = vsub.f32 %v1407_v28, %v1932_v44  ;;  %v1465_v58 = vsub.f32 %v189_v35, %v1443_v46 }
  0x3e   : > { %263 = vmatpush.msra.mxu1 %v262_v37  ;;  %367 = vmatpush.msra.mxu2 %v1391_v19  ;;  %v1467_v59 = vand.u32 4294901760, %v185_v48  ;;  %v297_v61 = vsub.f32 %v1424_v33, %v1931_v47  ;;  %v1474_v62 = vand.u32 4294901760, %v183_v53  ;;  %v286_v0 = vand.u32 4294901760, %v285_v50  ;;  %v204_v37 = vld [vmem:[#allocation5 + $0xc8] sm:$0xff]  ;;  %p1182_p5 = pneg %p1181_p3 }
  0x3f   : > { %222 = vmatpush.msra.mxu0 %v1372_v11  ;;  %418 = vmatpush.msra.mxu3 %v1372_v11  ;;  %v1928_v1 = vand.u32 4294901760, %v1453_v51  ;;  %v1479_v2 = vsub.f32 %v187_v42, %v1455_v52  ;;  %v1481_v7 = vand.u32 4294901760, %v210_v55  ;;  %v303_v8 = vsub.f32 %v1437_v41, %v1929_v54 }
  0x40   : > { %269 = vmatpush.msra.mxu1 %v268_v43  ;;  %370 = vmatpush.msra.mxu2 %v1401_v25  ;;  %v1488_v12 = vand.u32 4294901760, %v181_v60  ;;  %v292_v21 = vand.u32 4294901760, %v291_v57  ;;  %v1927_v29 = vand.u32 4294901760, %v1465_v58  ;;  %v1493_v30 = vsub.f32 %v185_v48, %v1467_v59  ;;  %v202_v48 = vld [vmem:[#allocation5 + $0xb8] sm:$0xff]  ;;  %p1187_p9 = pnand %p1186_p7, %p1182_p5 }
  0x41   : > { %224 = vmatpush.msra.mxu0 %v1385_v17  ;;  %420 = vmatpush.msra.mxu3 %v1385_v17  ;;  %v1495_v31 = vand.u32 4294901760, %v208_v63  ;;  %v298_v34 = vand.u32 4294901760, %v297_v61  ;;  %v1500_v35 = vsub.f32 %v183_v53, %v1474_v62  ;;  %v1502_v36 = vand.u32 4294901760, %v179_v6  ;;  %v200_v61 = vld [vmem:[#allocation5 + $0xa8] sm:$0xff] }
  0x42   : > { %275 = vmatpush.msra.mxu1 %v274_v49  ;;  %373 = vmatpush.msra.mxu2 %v1407_v28  ;;  %1960 = vst [vmem:[#allocation11_spill] sm:$0xff] %v1488_v12  ;;  %v309_v38 = vsub.f32 %v1453_v51, %v1928_v1  ;;  %v1930_v40 = vand.u32 4294901760, %v1479_v2  ;;  %v1510_v42 = vsub.f32 %v210_v55, %v1481_v7  ;;  %v1512_v43 = vand.u32 4294901760, %v206_v13 }
  0x43   : > { %226 = vmatpush.msra.mxu0 %v1393_v20  ;;  %422 = vmatpush.msra.mxu3 %v1393_v20  ;;  %1961 = vst [vmem:[#allocation12_spill] sm:$0xff] %v1502_v36  ;;  %v304_v49 = vand.u32 4294901760, %v303_v8  ;;  %v1517_v50 = vsub.f32 %v181_v60, %v1488_v12  ;;  %v315_v53 = vsub.f32 %v1465_v58, %v1927_v29  ;;  %v1934_v55 = vand.u32 4294901760, %v1493_v30 }
  0x44   : > { %281 = vmatpush.msra.mxu1 %v280_v56  ;;  %376 = vmatpush.msra.mxu2 %v1424_v33  ;;  %v1525_v56 = vsub.f32 %v208_v63, %v1495_v31  ;;  %v1527_v57 = vand.u32 4294901760, %v204_v37  ;;  %v1938_v60 = vand.u32 4294901760, %v1500_v35  ;;  %v1535_v8 = vand.u32 4294901760, %v202_v48 }
  0x45   : > { %228 = vmatpush.msra.mxu0 %v1420_v32  ;;  %424 = vmatpush.msra.mxu3 %v1420_v32  ;;  %v321_v63 = vsub.f32 %v1479_v2, %v1930_v40  ;;  %v1937_v29 = vand.u32 4294901760, %v1510_v42  ;;  %v1543_v1 = vsub.f32 %v206_v13, %v1512_v43  ;;  %v1548_v54 = vand.u32 4294901760, %v200_v61 }
  0x46   : > { %287 = vmatpush.msra.mxu1 %v286_v0  ;;  %379 = vmatpush.msra.mxu2 %v1437_v41  ;;  %1962 = vst [vmem:[#allocation13_spill] sm:$0xff] %v1525_v56  ;;  %v1533_v0 = vsub.f32 %v179_v6, %v1502_v36  ;;  %v1943_v6 = vand.u32 4294901760, %v1517_v50  ;;  %v327_v40 = vsub.f32 %v1493_v30, %v1934_v55  ;;  %v1942_v13 = vand.u32 4294901760, %v1525_v56 }
  0x47   : > { %230 = vmatpush.msra.mxu0 %v1441_v45  ;;  %426 = vmatpush.msra.mxu3 %v1441_v45  ;;  %1963 = vst [vmem:[#allocation14_spill] sm:$0xff] %v1543_v1  ;;  %v1556_v47 = vsub.f32 %v204_v37, %v1527_v57  ;;  %v322_v55 = vand.u32 4294901760, %v321_v63  ;;  %v596_v37 = vsub.f32 %v1510_v42, %v1937_v29  ;;  %v1947_v27 = vand.u32 4294901760, %v1543_v1  ;;  %v194_v63 = vld [vmem:[#allocation5 + $0x78] sm:$0xff] }
  0x48   : > { %293 = vmatpush.msra.mxu1 %v292_v21  ;;  %382 = vmatpush.msra.mxu2 %v1453_v51  ;;  %v310_v21 = vand.u32 4294901760, %v309_v38  ;;  %v316_v38 = vand.u32 4294901760, %v315_v53  ;;  %v1946_v44 = vand.u32 4294901760, %v1533_v0  ;;  %v1565_v53 = vsub.f32 %v202_v48, %v1535_v8 }
  0x49   : > { %232 = vmatpush.msra.mxu0 %v1443_v46  ;;  %428 = vmatpush.msra.mxu3 %v1443_v46  ;;  %1964 = vst [vmem:[#allocation15_spill] sm:$0xff] %v1556_v47  ;;  %v339_v48 = vsub.f32 %v1517_v50, %v1943_v6  ;;  %v328_v29 = vand.u32 4294901760, %v327_v40  ;;  %v1587_v23 = vand.u32 4294901760, %v196_v39  ;;  %v192_v40 = vld [vmem:[#allocation5 + $0x68] sm:$0xff]  ;;  %v608_v6 = vsub.f32 %v1543_v1, %v1947_v27 }
  0x4a   : > { %299 = vmatpush.msra.mxu1 %v298_v34  ;;  %385 = vmatpush.msra.mxu2 %v1465_v58  ;;  %v198_v34 = vld [vmem:[#allocation5 + $0x98] sm:$0xff]  ;;  %v1614_v1 = vand.u32 4294901760, %v192_v40  ;;  %vm903_vm1 = vcmask 785920  }
  0x4b   : > { %234 = vmatpush.msra.mxu0 %v1455_v52  ;;  %430 = vmatpush.msra.mxu3 %v1455_v52  ;;  %v1572_v26 = vand.u32 4294901760, %v198_v34 }
  0x4c   : > { %305 = vmatpush.msra.mxu1 %v304_v49  ;;  %388 = vmatpush.msra.mxu2 %v1479_v2  ;;  %v333_v49 = vsub.f32 %v1500_v35, %v1938_v60  ;;  %v602_v60 = vsub.f32 %v1525_v56, %v1942_v13  ;;  %v597_v13 = vand.u32 4294901760, %v596_v37  ;;  %v340_v56 = vand.u32 4294901760, %v339_v48 }
  0x4d   : > { %236 = vmatpush.msra.mxu0 %v1467_v59  ;;  %432 = vmatpush.msra.mxu3 %v1467_v59  ;;  %v1600_v24 = vsub.f32 %v198_v34, %v1572_v26  ;;  %v1612_v34 = vsub.f32 %v196_v39, %v1587_v23  ;;  %v1966_v48 = vand.u32 4294901760, %v1376_v14  ;;  %v1968_v14 = vand.u32 4294901760, %v1379_v15 }
  0x4e   : > { %311 = vmatpush.msra.mxu1 %v310_v21  ;;  %391 = vmatpush.msra.mxu2 %v1493_v30  ;;  %v1580_v21 = vsub.f32 %v200_v61, %v1548_v54  ;;  %v334_v22 = vand.u32 4294901760, %v333_v49  ;;  %v345_v61 = vsub.f32 %v1533_v0, %v1946_v44  ;;  %v1602_v49 = vand.u32 4294901760, %v194_v63 }
  0x4f   : > { %238 = vmatpush.msra.mxu0 %v1474_v62  ;;  %434 = vmatpush.msra.mxu3 %v1474_v62  ;;  %v603_v37 = vand.u32 4294901760, %v602_v60  ;;  %v188_v60 = vld [vmem:[#allocation5 + $0x48] sm:$0xff]  ;;  %v631_v39 = vand.u32 4294901760, %v1600_v24  ;;  %v1970_v15 = vand.u32 4294901760, %v1383_v16 }
  0x50   : > { %317 = vmatpush.msra.mxu1 %v316_v38  ;;  %394 = vmatpush.msra.mxu2 %v1500_v35  ;;  %v1965_v38 = vand.u32 4294901760, %v1556_v47  ;;  %v346_v44 = vand.u32 4294901760, %v345_v61  ;;  %v1969_v61 = vand.u32 4294901760, %v1580_v21 }
  0x51   : > { %240 = vmatpush.msra.mxu0 %v1488_v12  ;;  %436 = vmatpush.msra.mxu3 %v1488_v12 }
  0x52   : > { %323 = vmatpush.msra.mxu1 %v322_v55  ;;  %397 = vmatpush.msra.mxu2 %v1517_v50  ;;  %v190_v55 = vld [vmem:[#allocation5 + $0x58] sm:$0xff]  ;;  %v614_v27 = vsub.f32 %v1556_v47, %v1965_v38  ;;  %v609_v38 = vand.u32 4294901760, %v608_v6  ;;  %v1624_v47 = vsub.f32 %v194_v63, %v1602_v49  ;;  %v637_v6 = vand.u32 4294901760, %v1612_v34 }
  0x53   : > { %242 = vmatpush.msra.mxu0 %v1502_v36  ;;  %438 = vmatpush.msra.mxu3 %v1502_v36  ;;  %v1626_v12 = vand.u32 4294901760, %v190_v55  ;;  %v1638_v63 = vand.u32 4294901760, %v188_v60 }
  0x54   : > { %329 = vmatpush.msra.mxu1 %v328_v29  ;;  %400 = vmatpush.msra.mxu2 %v1533_v0  ;;  %v1967_v29 = vand.u32 4294901760, %v1565_v53 }
  0x55   : > { %449 = vmatpush.msrb.mxu0 %v1966_v48  ;;  %598 = vmatpush.msrb.mxu3 %v597_v13  ;;  %v626_v48 = vsub.f32 %v1580_v21, %v1969_v61  ;;  %v1636_v13 = vsub.f32 %v192_v40, %v1614_v1  ;;  %v1649_v40 = vsub.f32 %v190_v55, %v1626_v12  ;;  %v186_v61 = vld [vmem:[#allocation5 + $0x38] sm:$0xff] }
  0x56   : > { %553 = vmatpush.msrb.mxu2 %v1481_v7  ;;  %v620_v36 = vsub.f32 %v1565_v53, %v1967_v29  ;;  %335 = vmatpush.msra.mxu1 %v334_v22  ;;  %v615_v22 = vand.u32 4294901760, %v614_v27  ;;  %v178_v29 = vld [vmem:[%s1352_s6] sm:$0xff]  ;;  %v632_v27 = vsub.f32 %v1600_v24, %v631_v39  ;;  %v1662_v55 = vsub.f32 %v188_v60, %v1638_v63 }
  0x57   : > { %453 = vmatpush.msrb.mxu0 %v1968_v14  ;;  %604 = vmatpush.msrb.mxu3 %v603_v37  ;;  %v1971_v37 = vand.u32 4294901760, %v1388_v18  ;;  %v1654_v16 = vand.u32 4294901760, %v178_v29  ;;  %v184_v18 = vld [vmem:[#allocation5 + $0x28] sm:$0xff]  ;;  %v182_v60 = vld [vmem:[#allocation5 + $0x18] sm:$0xff] }
  0x58   : > { %555 = vmatpush.msrb.mxu2 %v1495_v31  ;;  %341 = vmatpush.msra.mxu1 %v340_v56  ;;  %v621_v14 = vand.u32 4294901760, %v620_v36  ;;  %v1954_v56 = vand.u32 4294901760, %v1624_v47  ;;  %v638_v36 = vsub.f32 %v1612_v34, %v637_v6 }
  0x59   : > { %457 = vmatpush.msrb.mxu0 %v1970_v15  ;;  %610 = vmatpush.msrb.mxu3 %v609_v38  ;;  %v649_v38 = vand.u32 4294901760, %v1636_v13  ;;  %v655_v15 = vand.u32 4294901760, %v1649_v40 }
  0x5a   : > { %557 = vmatpush.msrb.mxu2 %v1512_v43  ;;  %347 = vmatpush.msra.mxu1 %v346_v44  ;;  %v627_v44 = vand.u32 4294901760, %v626_v48  ;;  %v644_v48 = vsub.f32 %v1624_v47, %v1954_v56  ;;  %v1685_v56 = vand.u32 4294901760, %v184_v18 }
  0x5b   : > { %461 = vmatpush.msrb.mxu0 %v1971_v37  ;;  %616 = vmatpush.msrb.mxu3 %v615_v22  ;;  %v633_v22 = vand.u32 4294901760, %v632_v27  ;;  %v1672_v37 = vand.u32 4294901760, %v186_v61  ;;  %v650_v27 = vsub.f32 %v1636_v13, %v649_v38 }
  0x5c   : > { %516 = vmatpush.msrb.mxu1 %v1362_v3  ;;  %559 = vmatpush.msrb.mxu2 %v1527_v57  ;;  %v1972_v3 = vand.u32 4294901760, %v1391_v19  ;;  %v1678_v19 = vsub.f32 %v178_v29, %v1654_v16  ;;  %v645_v29 = vand.u32 4294901760, %v644_v48 }
  0x5d   : > { %622 = vmatpush.msrb.mxu3 %v621_v14  ;;  %v639_v14 = vand.u32 4294901760, %v638_v36  ;;  %v1695_v36 = vsub.f32 %v186_v61, %v1672_v37  ;;  %v1710_v61 = vsub.f32 %v184_v18, %v1685_v56  ;;  %v1977_v18 = vand.u32 4294901760, %v1453_v51  ;;  %349 = vmatmul.f32.vlgmr.msra.gmra.mxu1 %v1654_v16 }
  0x5e   : > { %518 = vmatpush.msrb.mxu1 %v1364_v4  ;;  %465 = vmatpush.msrb.mxu0 %v1972_v3  ;;  %v1973_v4 = vand.u32 4294901760, %v1401_v25  ;;  %v661_v3 = vand.u32 4294901760, %v1662_v55  ;;  %v180_v25 = vld [vmem:[#allocation5 + $0x8] sm:$0xff] }
  0x5f   : > { %561 = vmatpush.msrb.mxu2 %v1535_v8  ;;  %628 = vmatpush.msrb.mxu3 %v627_v44  ;;  %v656_v44 = vsub.f32 %v1649_v40, %v655_v15 }
  0x60   : > { %520 = vmatpush.msrb.mxu1 %v1366_v5  ;;  %469 = vmatpush.msrb.mxu0 %v1973_v4  ;;  %v1974_v5 = vand.u32 4294901760, %v1407_v28  ;;  %v1697_v4 = vand.u32 4294901760, %v182_v60  ;;  %v1703_v28 = vand.u32 4294901760, %v1678_v19  ;;  %v662_v48 = vsub.f32 %v1662_v55, %v661_v3 }
  0x61   : > { %563 = vmatpush.msrb.mxu2 %v1548_v54  ;;  %634 = vmatpush.msrb.mxu3 %v633_v22  ;;  %v651_v22 = vand.u32 4294901760, %v650_v27 }
  0x62   : > { %522 = vmatpush.msrb.mxu1 %v1368_v9  ;;  %473 = vmatpush.msrb.mxu0 %v1974_v5  ;;  %v1975_v9 = vand.u32 4294901760, %v1424_v33  ;;  %v1712_v5 = vand.u32 4294901760, %v180_v25  ;;  %v657_v33 = vand.u32 4294901760, %v656_v44  ;;  %v1720_v27 = vsub.f32 %v182_v60, %v1697_v4 }
  0x63   : > { %565 = vmatpush.msrb.mxu2 %v1572_v26  ;;  %640 = vmatpush.msrb.mxu3 %v639_v14  ;;  %v667_v14 = vand.u32 4294901760, %v1695_v36  ;;  %v1978_v60 = vand.u32 4294901760, %v1465_v58 }
  0x64   : > { %524 = vmatpush.msrb.mxu1 %v1370_v10  ;;  %477 = vmatpush.msrb.mxu0 %v1975_v9  ;;  %v1976_v10 = vand.u32 4294901760, %v1437_v41  ;;  %v663_v41 = vand.u32 4294901760, %v662_v48  ;;  %v1730_v44 = vsub.f32 %v180_v25, %v1712_v5  ;;  %v679_v51 = vand.u32 4294901760, %v1720_v27 }
  0x65   : > { %567 = vmatpush.msrb.mxu2 %v1587_v23  ;;  %646 = vmatpush.msrb.mxu3 %v645_v29  ;;  %v673_v29 = vand.u32 4294901760, %v1710_v61  ;;  %v1979_v9 = vand.u32 4294901760, %v1479_v2 }
  0x66   : > { %526 = vmatpush.msrb.mxu1 %v1372_v11  ;;  %481 = vmatpush.msrb.mxu0 %v1976_v10  ;;  %v246_v11 = vsub.f32 %v1678_v19, %v1703_v28  ;;  %v685_v58 = vand.u32 4294901760, %v1730_v44  ;;  %v1982_v10 = vand.u32 4294901760, %v1517_v50  ;;  %v1985_v50 = vld [vmem:[#allocation11_spill] sm:$0xff] }
  0x67   : > { %569 = vmatpush.msrb.mxu2 %v1602_v49  ;;  %652 = vmatpush.msrb.mxu3 %v651_v22  ;;  %v680_v22 = vsub.f32 %v1720_v27, %v679_v51 }
  0x68   : > { %528 = vmatpush.msrb.mxu1 %v1385_v17  ;;  %485 = vmatpush.msrb.mxu0 %v1977_v18  ;;  %v668_v17 = vsub.f32 %v1695_v36, %v667_v14  ;;  %v1743_v25 = vand.u32 4294901760, %v246_v11 }
  0x69   : > { %571 = vmatpush.msrb.mxu2 %v1614_v1  ;;  %658 = vmatpush.msrb.mxu3 %v657_v33  ;;  %v1983_v33 = vand.u32 4294901760, %v1533_v0  ;;  %v1989_v0 = vld [vmem:[#allocation14_spill] sm:$0xff] }
  0x6a   : > { %530 = vmatpush.msrb.mxu1 %v1393_v20  ;;  %489 = vmatpush.msrb.mxu0 %v1978_v60  ;;  %v674_v20 = vsub.f32 %v1710_v61, %v673_v29  ;;  %v669_v2 = vand.u32 4294901760, %v668_v17  ;;  %v1990_v11 = vand.u32 4294901760, %v1989_v0  ;;  %v1993_v60 = vand.u32 4294901760, %v1565_v53 }
  0x6b   : > { %573 = vmatpush.msrb.mxu2 %v1626_v12  ;;  %664 = vmatpush.msrb.mxu3 %v663_v41 }
  0x6c   : > { %532 = vmatpush.msrb.mxu1 %v1420_v32  ;;  %493 = vmatpush.msrb.mxu0 %v1979_v9  ;;  %v1980_v32 = vand.u32 4294901760, %v1493_v30  ;;  %v675_v48 = vand.u32 4294901760, %v674_v20  ;;  %v686_v30 = vsub.f32 %v1730_v44, %v685_v58 }
  0x6d   : > { %575 = vmatpush.msrb.mxu2 %v1638_v63  ;;  %248 = vmatmul.f32.vlgmr.msra.gmra.mxu0 %v1743_v25 }
  0x6e   : > { %534 = vmatpush.msrb.mxu1 %v1441_v45  ;;  %403 = vmatmul.f32.vlgmr.msra.gmra.mxu2 %v1678_v19  ;;  %v1981_v45 = vand.u32 4294901760, %v1500_v35  ;;  %v687_v35 = vand.u32 4294901760, %v686_v30 }
  0x6f   : > { %497 = vmatpush.msrb.mxu0 %v1980_v32  ;;  %577 = vmatpush.msrb.mxu2 %v1672_v37 }
  0x70   : > { %536 = vmatpush.msrb.mxu1 %v1443_v46  ;;  %442 = vmatmul.f32.vlgmr.msra.gmra.mxu3 %v1703_v28  ;;  %v681_v46 = vand.u32 4294901760, %v680_v22 }
  0x71   : > { %501 = vmatpush.msrb.mxu0 %v1981_v45  ;;  %579 = vmatpush.msrb.mxu2 %v1685_v56 }
  0x72   : > { %538 = vmatpush.msrb.mxu1 %v1455_v52  ;;  %670 = vmatpush.msrb.mxu3 %v669_v2  ;;  %v1984_v52 = vand.u32 4294901760, %v1510_v42 }
  0x73   : > { %505 = vmatpush.msrb.mxu0 %v1982_v10  ;;  %581 = vmatpush.msrb.mxu2 %v1697_v4 }
  0x74   : > { %540 = vmatpush.msrb.mxu1 %v1467_v59  ;;  %676 = vmatpush.msrb.mxu3 %v675_v48  ;;  %v1986_v59 = vld [vmem:[#allocation13_spill] sm:$0xff] }
  0x75   : > { %509 = vmatpush.msrb.mxu0 %v1983_v33  ;;  %583 = vmatpush.msrb.mxu2 %v1712_v5  ;;  %v1987_v18 = vand.u32 4294901760, %v1986_v59 }
  0x76   : > { %542 = vmatpush.msrb.mxu1 %v1474_v62  ;;  %682 = vmatpush.msrb.mxu3 %v681_v46  ;;  %v1988_v62 = vld [vmem:[#allocation12_spill] sm:$0xff] }
  0x77   : > { %696 = vmatpush.msra.mxu0 %v1510_v42  ;;  %790 = vmatpush.msra.mxu2 %v1984_v52  ;;  %v1991_v42 = vld [vmem:[#allocation15_spill] sm:$0xff] }
  0x78   : > { %544 = vmatpush.msrb.mxu1 %v1985_v50  ;;  %688 = vmatpush.msrb.mxu3 %v687_v35  ;;  %v1992_v41 = vand.u32 4294901760, %v1991_v42 }
  0x79   : > { %511 = vmatmul.f32.vlgmr.msrb.gmra.mxu0 %v1654_v16  ;;  %794 = vmatpush.msra.mxu2 %v1987_v18 }
  0x7a   : > { %699 = vmatpush.msra.mxu0 %v1986_v59  ;;  %857 = vmatpush.msra.mxu3 %v1481_v7 }
  0x7b   : > { %546 = vmatpush.msrb.mxu1 %v1988_v62  ;;  %798 = vmatpush.msra.mxu2 %v1990_v11 }
  0x7c   : > { %548 = vmatmul.f32.vlgmr.msrb.gmra.mxu1 %v1654_v16  ;;  %702 = vmatpush.msra.mxu0 %v1989_v0 }
  0x7d   : > { %749 = vmatpush.msra.mxu1 %v1481_v7  ;;  %859 = vmatpush.msra.mxu3 %v1495_v31  ;;  %v1994_v7 = vand.u32 4294901760, %v1580_v21 }
  0x7e   : > { %705 = vmatpush.msra.mxu0 %v1991_v42  ;;  %802 = vmatpush.msra.mxu2 %v1992_v41 }
  0x7f   : > { %751 = vmatpush.msra.mxu1 %v1495_v31  ;;  %861 = vmatpush.msra.mxu3 %v1512_v43  ;;  %v1995_v31 = vand.u32 4294901760, %v1624_v47 }
  0x80   : > { %708 = vmatpush.msra.mxu0 %v1565_v53  ;;  %806 = vmatpush.msra.mxu2 %v1993_v60 }
  0x81   : > { %753 = vmatpush.msra.mxu1 %v1512_v43  ;;  %863 = vmatpush.msra.mxu3 %v1527_v57 }
  0x82   : > { %711 = vmatpush.msra.mxu0 %v1580_v21  ;;  %810 = vmatpush.msra.mxu2 %v1994_v7 }
  0x83   : > { %755 = vmatpush.msra.mxu1 %v1527_v57  ;;  %865 = vmatpush.msra.mxu3 %v1535_v8 }
  0x84   : > { %714 = vmatpush.msra.mxu0 %v1600_v24  ;;  %814 = vmatpush.msra.mxu2 %v631_v39 }
  0x85   : > { %757 = vmatpush.msra.mxu1 %v1535_v8  ;;  %867 = vmatpush.msra.mxu3 %v1548_v54 }
  0x86   : > { %717 = vmatpush.msra.mxu0 %v1612_v34  ;;  %818 = vmatpush.msra.mxu2 %v637_v6 }
  0x87   : > { %759 = vmatpush.msra.mxu1 %v1548_v54  ;;  %869 = vmatpush.msra.mxu3 %v1572_v26 }
  0x88   : > { %720 = vmatpush.msra.mxu0 %v1624_v47  ;;  %822 = vmatpush.msra.mxu2 %v1995_v31 }
  0x89   : > { %761 = vmatpush.msra.mxu1 %v1572_v26  ;;  %871 = vmatpush.msra.mxu3 %v1587_v23 }
  0x8a   : > { %723 = vmatpush.msra.mxu0 %v1636_v13  ;;  %826 = vmatpush.msra.mxu2 %v649_v38 }
  0x8b   : > { %763 = vmatpush.msra.mxu1 %v1587_v23  ;;  %873 = vmatpush.msra.mxu3 %v1602_v49  ;;  %v1238_v23 = vmov 0.0  }
  0x8c   : > { %726 = vmatpush.msra.mxu0 %v1649_v40  ;;  %830 = vmatpush.msra.mxu2 %v655_v15  ;;  %893 = vst [vmem:[%s1868_s27] sm:$0xff] %v1238_v23 }
  0x8d   : > { %765 = vmatpush.msra.mxu1 %v1602_v49  ;;  %875 = vmatpush.msra.mxu3 %v1614_v1  ;;  %894 = vst [vmem:[%s1868_s27 + $0x8] sm:$0xff] %v1238_v23 }
  0x8e   : > { %729 = vmatpush.msra.mxu0 %v1662_v55  ;;  %834 = vmatpush.msra.mxu2 %v661_v3  ;;  %895 = vst [vmem:[%s1868_s27 + $0x10] sm:$0xff] %v1238_v23 }
  0x8f   : > { %767 = vmatpush.msra.mxu1 %v1614_v1  ;;  %877 = vmatpush.msra.mxu3 %v1626_v12  ;;  %896 = vst [vmem:[%s1868_s27 + $0x18] sm:$0xff] %v1238_v23 }
  0x90   : > { %589 = vmatmul.f32.vlgmr.msrb.gmra.mxu2 %v1743_v25  ;;  %690 = vmatmul.f32.vlgmr.msrb.gmra.mxu3 %v1654_v16 }
  0x91   : > { %732 = vmatpush.msra.mxu0 %v1695_v36  ;;  %769 = vmatpush.msra.mxu1 %v1626_v12 }
  0x92   : > { %838 = vmatpush.msra.mxu2 %v667_v14  ;;  %879 = vmatpush.msra.mxu3 %v1638_v63 }
  0x93   : > { %735 = vmatpush.msra.mxu0 %v1710_v61  ;;  %771 = vmatpush.msra.mxu1 %v1638_v63 }
  0x94   : > { %842 = vmatpush.msra.mxu2 %v673_v29  ;;  %881 = vmatpush.msra.mxu3 %v1672_v37 }
  0x95   : > { %738 = vmatpush.msra.mxu0 %v1720_v27  ;;  %773 = vmatpush.msra.mxu1 %v1672_v37 }
  0x96   : > { %846 = vmatpush.msra.mxu2 %v679_v51  ;;  %883 = vmatpush.msra.mxu3 %v1685_v56 }
  0x97   : > { %741 = vmatpush.msra.mxu0 %v1730_v44  ;;  %775 = vmatpush.msra.mxu1 %v1685_v56 }
  0x98   : > { %850 = vmatpush.msra.mxu2 %v685_v58  ;;  %885 = vmatpush.msra.mxu3 %v1697_v4 }
  0x99   : > { %744 = vmatmul.f32.vlgmr.msra.gmra.mxu0 %v1678_v19  ;;  %852 = vmatmul.f32.vlgmr.msra.gmra.mxu2 %v1654_v16 }
  0x9a   : > { %777 = vmatpush.msra.mxu1 %v1697_v4  ;;  %887 = vmatpush.msra.mxu3 %v1712_v5 }
  0x9b   : > { %889 = vmatmul.f32.vlgmr.msra.gmra.mxu3 %v1654_v16 }
  0x9c   : > { %779 = vmatpush.msra.mxu1 %v1712_v5 }
  0x9d   : > { %783 = vmatmul.f32.vlgmr.msra.gmra.mxu1 %v1703_v28 }
  0xda   : > { %v350_v26 = vpop.f32.mrf.mxu1 }
  0xea   : > { %v249_v24 = vpop.f32.mrf.mxu0 }
  0xeb   : > { %v351_v47 = vadd.f32 %v350_v26, %v249_v24 }
  0xf1   : > { %v404_v54 = vpop.f32.mrf.mxu2 }
  0xf2   : > { %v405_v1 = vadd.f32 %v404_v54, %v351_v47 }
  0xf3   : > { %v443_v12 = vpop.f32.mrf.mxu3 }
  0xf4   : > { %v444_v43 = vadd.f32 %v443_v12, %v405_v1 }
  0xf6   : > { %v512_v57 = vpop.f32.mrf.mxu0 }
  0xf7   : > { %v513_v8 = vadd.f32 %v512_v57, %v444_v43 }
  0xf9   : > { %v549_v53 = vpop.f32.mrf.mxu1 }
  0xfa   : > { %v550_v21 = vadd.f32 %v549_v53, %v513_v8 }
  0xfc   : > { %900 = vrot.lane.b32.xlu1 %v550_v21, %s1239_s7  ;;  %905 = vrot.lane.b32.xlu0 %v550_v21, %s1240_s8  ;;  %898 = vst.msk [vmem:[%s1868_s27] sm:$0xff] %vm897_vm0, %v550_v21 }
 0x104   : > { %909 = vrot.lane.b32.xlu1 %v550_v21, %s1241_s13 }
 0x113   : > { %v590_v49 = vpop.f32.mrf.mxu2  ;;  %v691_v34 = vpop.f32.mrf.mxu3 }
 0x114   : > { %v692_v39 = vadd.f32 %v691_v34, %v590_v49 }
 0x116   : > { %v745_v6 = vpop.f32.mrf.mxu0 }
 0x117   : > { %v746_v13 = vadd.f32 %v745_v6, %v692_v39 }
 0x11a   : > { %v784_v63 = vpop.f32.mrf.mxu1 }
 0x11b   : > { %v785_v56 = vadd.f32 %v784_v63, %v746_v13 }
 0x11c   : > { %v853_v40 = vpop.f32.mrf.mxu2 }
 0x11d   : > { %v854_v16 = vadd.f32 %v853_v40, %v785_v56 }
 0x11e   : > { %v890_v38 = vpop.f32.mrf.mxu3 }
 0x11f   : > { %v891_v55 = vadd.f32 %v890_v38, %v854_v16 }
 0x121   : > { %915 = vrot.lane.b32.xlu2 %v891_v55, %s1239_s7  ;;  %919 = vrot.lane.b32.xlu0 %v891_v55, %s1240_s8  ;;  %913 = vst.msk [vmem:[%s1868_s27 + $0x10] sm:$0xff] %vm897_vm0, %v891_v55 }
 0x129   : > { %923 = vrot.lane.b32.xlu2 %v891_v55, %s1241_s13 }
 0x16e   : > { %v901_v15 = vpop.permute.xlu1 %900  ;;  %v906_v37 = vpop.permute.xlu0 %905 }
 0x16f   : > { %904 = vst.msk [vmem:[%s1868_s27] sm:$0xff] %vm903_vm1, %v901_v15 }
 0x170   : > { %908 = vst.msk [vmem:[%s1868_s27 + $0x8] sm:$0xff] %vm897_vm0, %v906_v37 }
 0x176   : > { %v910_v19 = vpop.permute.xlu1 %909 }
 0x177   : > { %912 = vst.msk [vmem:[%s1868_s27 + $0x8] sm:$0xff] %vm903_vm1, %v910_v19 }
 0x17b   : > { %v916_v3 = vpop.permute.xlu2 %915 }
 0x17c   : > { %918 = vst.msk [vmem:[%s1868_s27 + $0x10] sm:$0xff] %vm903_vm1, %v916_v3 }
 0x183   : > { %v924_v4 = vpop.permute.xlu2 %923 }
 0x193   : > { %v920_v36 = vpop.permute.xlu0 %919 }
 0x194   : > { %922 = vst.msk [vmem:[%s1868_s27 + $0x18] sm:$0xff] %vm897_vm0, %v920_v36 }
 0x195   : > { %926 = vst.msk [vmem:[%s1868_s27 + $0x18] sm:$0xff] %vm903_vm1, %v924_v4 }
 0x196   : > { %1190 = shalt.err (!%p1187_p9)
}
 0x197   : > { %1046 = dma.vmem_to_hbm [thread:$0]  (%p1317_p13), %s942_s20, 512, %s944_s21, %s928_s22  }
 0x198 PF: > { %s955_s29 = sand.u32 1, %s1221_s9   ;;  %p1996_p10 = scmp.ge.s32.totalorder %s1233_s12, 2 }
 0x199   : > { %s956_s17 = scalar_lea.sflag [#allocation4], %s955_s29 }
 0x19a   : > { %p1057_p11 = pnand %p1996_p10, %p1322_p4 }
 0x19c   : > { %p1058_p0 = pneg %p1057_p11 }
 0x19e   : > { %1216 = dma.done.wait (%p1058_p0), %s956_s17, 512  }
 0x19f   : > { %1218 = vsyncadd (%p1058_p0), %s956_s17, 4294966784  ;;  %p16_p2 = scmp.ge.s32.totalorder %s1297_s23, 4   ;;  %s1997_s9 = smov %s1225_s10 }
 0x1a0   : > { %s1998_s10 = smov %s1229_s11  ;;  %s1999_s11 = smov %s1309_s26 }
 0x1a1   : > { %s2000_s12 = smov %s1297_s23  ;;  %18 = sbr.rel (!%p16_p2) target bundleno = 6 (0x6), region = 77 }
 0x1a6   :  { %962 = vsyncpa [#allocation3], 1 }
 0x1a7   :  { %964 = vsyncpa [#allocation3 + $0x1], 1 }
 0x1a8   :  { %965 = vsyncpa [#allocation6], 1 }
 0x1a9   :  { %966 = vsyncpa [#allocation4], 1 }
 0x1aa   :  { %968 = vsyncpa [#allocation4 + $0x1], 1 }

</bundles_post_ra>
